<compile_context>
chip_gen: v7x
topology: tpu7x:2x2x1
jax: 0.10.0
libtpu: 0.0.40
codegen_flags: <defaults>
</compile_context>

<pallas_src>
import functools

import jax
import jax.numpy as jnp
from jax.experimental import pallas as pl
from jax.experimental.pallas import tpu as pltpu


def _proj_kernel(x_ref, w_ref, at_ref, haug_ref, *, fout, f_pad):
    """h = x @ W; scores = h @ a_t; pack [h | ones | s_src | s_dst | 0] into (T, Fpad)."""
    h = jnp.dot(x_ref[...], w_ref[...], preferred_element_type=jnp.float32)   # (T, Fout)
    s = jnp.dot(h, at_ref[...], preferred_element_type=jnp.float32)           # (T, 2)
    t = x_ref.shape[0]
    parts = [h, jnp.ones((t, 1), jnp.float32), s]
    tail = f_pad - fout - 3
    if tail > 0:
        parts.append(jnp.zeros((t, tail), jnp.float32))
    haug_ref[...] = jnp.concatenate(parts, axis=1)


def _attn_kernel(hi_ref, hj_ref, adj_ref, o_ref, acc_ref, *, fout, alpha):
    """One (row tile, col tile) step of masked attention + aggregation."""
    j = pl.program_id(1)

    @pl.when(j == 0)
    def _init():
        acc_ref[...] = jnp.zeros_like(acc_ref)

    s_src = hi_ref[:, fout + 1:fout + 2]                  # (TI, 1)
    s_dst = hj_ref[:, fout + 2:fout + 3]                  # (TJ, 1)
    score = s_src + jnp.transpose(s_dst)                  # (TI, TJ)
    lrelu = jnp.where(score > 0, score, alpha * score)
    # Mask with where (not multiply) so exp overflow at non-edges never makes inf*0=NaN.
    e = jnp.where(adj_ref[...] > 0, jnp.exp(-lrelu), 0.0)  # (TI, TJ) f32

    # bf16 MXU matmul, f32 accumulate.  Ones column of h_aug fuses the rowsum.
    acc_ref[...] += jnp.dot(
        e.astype(jnp.bfloat16),
        hj_ref[...].astype(jnp.bfloat16),
        preferred_element_type=jnp.float32,
    )

    @pl.when(j == pl.num_programs(1) - 1)
    def _finalize():
        acc = acc_ref[...]
        rowsum = acc[:, fout:fout + 1]                    # fused rowsum column
        inv = pl.reciprocal(jnp.where(rowsum > 0, rowsum, 1.0), approx=True)
        hp = acc * inv
        o_ref[...] = jnp.where(hp > 0, hp, jnp.exp(hp) - 1.0)   # ELU


def sp_graph_attention_layer(x, W, a, adj_mask, *, alpha, tile=128):
    """x: (N, Fin) f32, W: (Fin, Fout), a: (1, 2*Fout), adj_mask: (N, N) {0,1}."""
    N, Fin = x.shape
    Fout = W.shape[1]
    f_pad = 128 * pl.cdiv(Fout + 3, 128)      # lane-dense feature slab (>= Fout + 3)
    n_pad = tile * pl.cdiv(N, tile)

    # Wrapper glue: pad node dim, pre-split/transpose `a`, shrink the mask to bf16.
    x_p = jnp.zeros((n_pad, Fin), jnp.float32).at[:N, :].set(x.astype(jnp.float32))
    adj_p = jnp.zeros((n_pad, n_pad), jnp.bfloat16).at[:N, :N].set(
        adj_mask.astype(jnp.bfloat16))
    a_t = a.reshape(2, Fout).T.astype(jnp.float32)        # (Fout, 2): [a_src | a_dst]
    W32 = W.astype(jnp.float32)

    vmem_limit = 32 * 1024 * 1024

    # Pass 1: project + pack the augmented feature slab.
    proj = pl.pallas_call(
        functools.partial(_proj_kernel, fout=Fout, f_pad=f_pad),
        out_shape=jax.ShapeDtypeStruct((n_pad, f_pad), jnp.float32),
        grid_spec=pltpu.PrefetchScalarGridSpec(
            num_scalar_prefetch=0,
            grid=(n_pad // tile,),
            in_specs=[
                pl.BlockSpec((tile, Fin), lambda i: (i, 0)),
                pl.BlockSpec((Fin, Fout), lambda i: (0, 0)),
                pl.BlockSpec((Fout, 2), lambda i: (0, 0)),
            ],
            out_specs=pl.BlockSpec((tile, f_pad), lambda i: (i, 0)),
        ),
        compiler_params=pltpu.CompilerParams(
            dimension_semantics=("parallel",),
            vmem_limit_bytes=vmem_limit,
        ),
    )(x_p, W32, a_t)

    # Pass 2: tiled masked attention + aggregation (flash-style accumulation over j).
    out_p = pl.pallas_call(
        functools.partial(_attn_kernel, fout=Fout, alpha=alpha),
        out_shape=jax.ShapeDtypeStruct((n_pad, f_pad), jnp.float32),
        grid_spec=pltpu.PrefetchScalarGridSpec(
            num_scalar_prefetch=0,
            grid=(n_pad // tile, n_pad // tile),
            in_specs=[
                pl.BlockSpec((tile, f_pad), lambda i, j: (i, 0)),   # row tile of h_aug
                pl.BlockSpec((tile, f_pad), lambda i, j: (j, 0)),   # col tile of h_aug
                pl.BlockSpec((tile, tile), lambda i, j: (i, j)),    # bf16 adjacency tile
            ],
            out_specs=pl.BlockSpec((tile, f_pad), lambda i, j: (i, 0)),
            scratch_shapes=[pltpu.VMEM((tile, f_pad), jnp.float32)],
        ),
        compiler_params=pltpu.CompilerParams(
            dimension_semantics=("parallel", "arbitrary"),
            vmem_limit_bytes=vmem_limit,
        ),
    )(proj, proj, adj_p)

    return out_p[:N, :Fout]


def _xavier_normal(key, shape, gain):
    fan_out, fan_in = shape[0], shape[1]
    std = gain * (2.0 / (fan_in + fan_out)) ** 0.5
    return std * jax.random.normal(key, shape, dtype=jnp.float32)


def _reference(x, W, a, adj_mask, alpha):
    """Plain-JAX f32 reference with the same dense reformulation."""
    h = x @ W
    Fout = W.shape[1]
    s_src = jnp.sum(h * a[:, :Fout], axis=1, keepdims=True)
    s_dst = jnp.sum(h * a[:, Fout:], axis=1, keepdims=True)
    score = s_src + s_dst.T
    lrelu = jnp.where(score > 0, score, alpha * score)
    e = jnp.where(adj_mask > 0, jnp.exp(-lrelu), 0.0)
    rowsum = jnp.sum(e, axis=1, keepdims=True)
    rowsum = jnp.where(rowsum > 0, rowsum, 1.0)
    hp = (e @ h) / rowsum
    return jnp.where(hp > 0, hp, jnp.exp(hp) - 1.0)


if __name__ == "__main__":
    # Small shapes consistent with the module's forward: N nodes, Fin -> Fout.
    # N = 300 exercises the row/col tiling (grid 3x3 with tile=128) and the padding path.
    N, in_features, out_features = 300, 16, 32
    alpha = 0.2       # LeakyReLU negative slope
    # dropout is identity at eval time.

    key = jax.random.PRNGKey(0)
    k_w, k_a, k_x = jax.random.split(key, 3)

    # Deterministic parameter init (mirrors nn.init.xavier_normal_ with gain=1.414).
    W = _xavier_normal(k_w, (in_features, out_features), gain=1.414)
    a = _xavier_normal(k_a, (1, 2 * out_features), gain=1.414)

    # Deterministic node features.
    x = jax.random.normal(k_x, (N, in_features), dtype=jnp.float32)

    # Deterministic sparse adjacency (edge list): self-loops + two ring neighbors.
    rows = jnp.concatenate([jnp.arange(N), jnp.arange(N), jnp.arange(N)])
    cols = jnp.concatenate(
        [jnp.arange(N), (jnp.arange(N) + 1) % N, (jnp.arange(N) + 5) % N]
    )
    adj_mask = jnp.zeros((N, N), dtype=jnp.float32).at[rows, cols].set(1.0)

    out = sp_graph_attention_layer(x, W, a, adj_mask, alpha=alpha)
    out = jax.block_until_ready(out)

    ref = _reference(x, W, a, adj_mask, alpha)
    assert out.shape == (N, out_features)
    assert bool(jnp.all(jnp.isfinite(out)))
    # Kernel uses bf16 MXU inputs (f32 accumulate) + approx reciprocal, so compare to the
    # f32 reference with bf16-appropriate tolerances.
    assert jnp.allclose(out, ref, atol=5e-2, rtol=5e-2), float(jnp.max(jnp.abs(out - ref)))

    print("KERNEL_OK")
</pallas_src>

<mosaic_0001>
module attributes {stable_mosaic.version = 11 : i64} {
  func.func @_proj_kernel(%arg0: i32, %arg1: memref<128x16xf32, #tpu.memory_space<vmem>>, %arg2: memref<16x32xf32, #tpu.memory_space<vmem>>, %arg3: memref<32x2xf32, #tpu.memory_space<vmem>>, %arg4: memref<128x128xf32, #tpu.memory_space<vmem>>) attributes {dimension_semantics = [#tpu.dimension_semantics<parallel>], iteration_bounds = array<i64: 3>, scalar_prefetch = 0 : i64, scratch_operands = 0 : i64, tpu.core_type = #tpu.core_type<tc>, window_params = [{transform_indices = @transform_0, window_bounds = array<i64: 128, 16>}, {pipeline_mode = #tpu.pipeline_mode<synchronous>, transform_indices = @transform_1, window_bounds = array<i64: 16, 32>}, {pipeline_mode = #tpu.pipeline_mode<synchronous>, transform_indices = @transform_2, window_bounds = array<i64: 32, 2>}, {transform_indices = @transform_3, window_bounds = array<i64: 128, 128>}]} {
    %c0 = arith.constant 0 : index
    %c0_0 = arith.constant 0 : index
    %0 = vector.load %arg1[%c0, %c0_0] : memref<128x16xf32, #tpu.memory_space<vmem>>, vector<128x16xf32>
    %c0_1 = arith.constant 0 : index
    %c0_2 = arith.constant 0 : index
    %1 = vector.load %arg2[%c0_1, %c0_2] : memref<16x32xf32, #tpu.memory_space<vmem>>, vector<16x32xf32>
    %cst = arith.constant dense<0.000000e+00> : vector<128x32xf32>
    %2 = tpu.matmul %0, %1, %cst {dimension_numbers = #tpu.dot_dimension_numbers<[1], [0], [0], [1], [0, 0, 1, 1], [], []>} : vector<128x16xf32>, vector<16x32xf32>, vector<128x32xf32> -> vector<128x32xf32>
    %c0_3 = arith.constant 0 : index
    %c0_4 = arith.constant 0 : index
    %3 = vector.load %arg3[%c0_3, %c0_4] : memref<32x2xf32, #tpu.memory_space<vmem>>, vector<32x2xf32>
    %cst_5 = arith.constant dense<0.000000e+00> : vector<128x2xf32>
    %4 = tpu.matmul %2, %3, %cst_5 {dimension_numbers = #tpu.dot_dimension_numbers<[1], [0], [0], [1], [0, 0, 1, 1], [], []>} : vector<128x32xf32>, vector<32x2xf32>, vector<128x2xf32> -> vector<128x2xf32>
    %cst_6 = arith.constant 1.000000e+00 : f32
    %5 = vector.broadcast %cst_6 : f32 to vector<128x1xf32>
    %cst_7 = arith.constant 0.000000e+00 : f32
    %6 = vector.broadcast %cst_7 : f32 to vector<128x93xf32>
    %7 = tpu.concatenate %2, %5, %4, %6 in 1 : vector<128x32xf32>, vector<128x1xf32>, vector<128x2xf32>, vector<128x93xf32> -> vector<128x128xf32>
    %c0_8 = arith.constant 0 : index
    %c0_9 = arith.constant 0 : index
    %8 = vector.load %arg4[%c0_8, %c0_9] : memref<128x128xf32, #tpu.memory_space<vmem>>, vector<128x128xf32>
    tpu.vector_store %arg4[%c0_8, %c0_9], %7 {strides = array<i32>} : memref<128x128xf32, #tpu.memory_space<vmem>>, vector<128x128xf32>,
    return
  }
  func.func @transform_0(%arg0: i32) -> (i32, i32) {
    %c0_i32 = arith.constant 0 : i32
    %c0_i32_0 = arith.constant 0 : i32
    return %arg0, %c0_i32 : i32, i32
  }
  func.func @transform_1(%arg0: i32) -> (i32, i32) {
    %c0_i32 = arith.constant 0 : i32
    %c0_i32_0 = arith.constant 0 : i32
    %c0_i32_1 = arith.constant 0 : i32
    return %c0_i32, %c0_i32_0 : i32, i32
  }
  func.func @transform_2(%arg0: i32) -> (i32, i32) {
    %c0_i32 = arith.constant 0 : i32
    %c0_i32_0 = arith.constant 0 : i32
    %c0_i32_1 = arith.constant 0 : i32
    return %c0_i32, %c0_i32_0 : i32, i32
  }
  func.func @transform_3(%arg0: i32) -> (i32, i32) {
    %c0_i32 = arith.constant 0 : i32
    %c0_i32_0 = arith.constant 0 : i32
    return %arg0, %c0_i32 : i32, i32
  }
}

</mosaic_0001>

<bundles_post_ra>
// kernel: tpu_custom_call.1
= control target key start
LH: loop header
LB: loop body
LE: loop exit
PB: predicated region body
PF: predicated region fallthrough
CT: control target
= control target key end

     0   :  { %8 = vsyncpa [#allocation3], 0  ;;  %s1378_s0 = inlined_call_operand.vmem [shape: f32[384,16], index: 0, kind: input, shape index: {}]   ;;  %s1379_s1 = inlined_call_operand.vmem [shape: f32[16,32], index: 1, kind: input, shape index: {}]   ;;  %s1380_s2 = inlined_call_operand.vmem [shape: f32[32,2], index: 2, kind: input, shape index: {}]   ;;  %s1381_s3 = inlined_call_operand.hbm [shape: f32[384,128], index: 3, kind: output, shape index: {}]  }
   0x1   :  { %10 = vsyncpa [#allocation3 + $0x1], 0  ;;  %s1073_s12 = smov 0   ;;  %s1075_s13 = smov 0  }
   0x2   :  { %s1077_s14 = smov 0   ;;  %s1079_s15 = smov 0  }
   0x3 LB: > { %s1094_s16 = sadd.s32 4294967295, %s1047_s15   ;;  %s788_s17 = sadd.s32 4294967294, %s1047_s15   ;;  %s1047_s15 = sphi %s1079_s15, %s1387_s15   ;;  %s1043_s14 = sphi %s1077_s14, %s1386_s14   ;;  %s1039_s13 = sphi %s1075_s13, %s1385_s13   ;;  %s1035_s12 = sphi %s1073_s12, %s1384_s12  }
   0x4   : > { %s1098_s18 = sadd.s32 1, %s1047_s15   ;;  %s91_s19 = sadd.s32 1, %s1043_s14 }
   0x5   : > { %s88_s20 = ssub.s32 %s1047_s15, %s1098_s18  ;;  %p101_p0 = scmp.ne.s32.totalorder %s1043_s14, %s1039_s13 }
   0x6   : > { %p89_p1 = scmp.eq.s32.totalorder %s88_s20, 0  ;;  %p102_p2 = scmp.eq.s32.totalorder %s1094_s16, 2 }
   0x7   : > { %p107_p3 = scmp.ne.s32.totalorder %s1039_s13, %s1035_s12  ;;  %p108_p4 = scmp.eq.s32.totalorder %s788_s17, 2 }
   0x8   : > { %s1109_s21 = scalar_select %p89_p1, %s1043_s14, %s91_s19  }
   0x9   : > { %p1111_p5 = por %p102_p2, %p101_p0  ;;  %p1115_p6 = por %p108_p4, %p107_p3 }
   0xa   : > { %p791_p7 = scmp.ge.s32.totalorder %s1047_s15, 1  ;;  %p141_p8 = scmp.lt.s32.totalorder %s1047_s15, 4 }
   0xc   : > { %p142_p9 = pnand %p791_p7, %p141_p8 }
   0xd   : > { %v188_v0 = vld [vmem:[%s1379_s1] sm:$0xff] (!%p142_p9)  ;;  %v189_v1 = vld [vmem:[%s1379_s1 + $0x8] sm:$0xff] (!%p142_p9)  ;;  %s793_s28 = sshll.u32 (!%p142_p9), %s1094_s16, 4  ;;  %v386_v5 = vld [vmem:[%s1380_s2 + $0x10] sm:$0xff] (!%p142_p9)  ;;  %vm190_vm0 = vcmask (!%p142_p9), 130048   ;;  %vm388_vm1 = vcmask (!%p142_p9), 261120  }
   0xe   : > { %145 = sbr.rel (%p142_p9) target bundleno = 616 (0x268), region = 32  ;;  %v384_v2 = vld [vmem:[%s1380_s2] sm:$0xff] (!%p142_p9)  ;;  %v931_v3 = vpack.c.bf16 (!%p142_p9), %v189_v1, %v188_v0  ;;  %p166_p10 = scmp.lt.s32.totalorder (!%p142_p9), %s793_s28, 47  ;;  %v385_v4 = vld [vmem:[%s1380_s2 + $0x8] sm:$0xff] (!%p142_p9)  ;;  %v387_v6 = vld [vmem:[%s1380_s2 + $0x18] sm:$0xff] (!%p142_p9)  ;;  %vm662_vm2 = vcmask (!%p142_p9), 269312  }
   0xf   : > { %v935_v7 = vpack.c.bf16 (!%p142_p9), %v385_v4, %v384_v2  ;;  %v939_v8 = vpack.c.bf16 (!%p142_p9), %v387_v6, %v386_v5  ;;  %s1049_s20 = smov (!%p142_p9), 33   ;;  %s162_s24 = sand.u32 (!%p142_p9), 1, %s1039_s13   ;;  %vm679_vm3 = vcmask (!%p142_p9), 285696  }
  0x10   : > { %932 = vmatprep.subr.bf16.mxu0 (!%p142_p9), %v931_v3  ;;  %s792_s25 = sshll.u32 (!%p142_p9), %s162_s24, 7  ;;  %s832_s27 = sshll.u32 (!%p142_p9), %s1094_s16, 11 }
  0x11   : > { %934 = vmatpush3.bf16.msra.mxu0 (!%p142_p9), %v931_v3  ;;  %936 = vmatprep.subr.bf16.mxu1 (!%p142_p9), %v935_v7  ;;  %s1263_s26 = scalar_lea.vmem (!%p142_p9), [#allocation2], %s792_s25  ;;  %s1327_s4 = scalar_lea.hbm (!%p142_p9), %s1381_s3, %s832_s27 }
  0x12   : > { %938 = vmatpush3.bf16.msra.mxu1 (!%p142_p9), %v935_v7  ;;  %s1337_s16 = scalar_lea.sflag (!%p142_p9), [#allocation3], %s162_s24  ;;  %s1050_s6 = smov (!%p142_p9), [#allocation2]  }
  0x13   : > { %940 = vmatprep.subr.bf16.mxu1 (!%p142_p9), %v939_v8  ;;  %s989_s7 = sshll.u32 (!%p142_p9), %s1050_s6, 4  ;;  %s990_s7 = int_to_ptr.vmem [resolvable:$false] %s989_s7 }
  0x14   : > { %s991_s8 = scalar_lea.vmem (!%p142_p9), %s990_s7, 4096 }
  0x15   : > { %s1389_s28 = smov (!%p166_p10, %s793_s28), 47 }
  0x16   : > { %s794_s10 = sshll.u32 %s1389_s28, 3  ;;  %942 = vmatpush3.bf16.msra.mxu1 %v939_v8  ;;  %s726_s28 = sshll.u32 %s1263_s26, 4  ;;  %s1329_s28 = int_to_ptr.vmem [resolvable:$true] %s726_s28 }
  0x17   : > { %s1143_s19 = scalar_lea.vmem %s1378_s0, %s794_s10  ;;  %s985_s5 = scalar_lea.vmem %s1329_s28, 2048 }
  0x18   : > { %v172_v9 = vld [vmem:[%s1143_s19] sm:$0xff]  ;;  %v173_v10 = vld [vmem:[%s1143_s19 + $0x8] sm:$0xff]  ;;  %v174_v11 = vld [vmem:[%s1143_s19 + $0x10] sm:$0xff]  ;;  %p986_p11 = scmp.ne.s32.totalorder %s1329_s28, %s985_s5  ;;  %p992_p0 = scmp.lt.s32.totalorder %s1329_s28, %s990_s7 }
  0x19   : > { %875 = vmatprep.mubr.msk.f32.mxu0 %vm190_vm0, %v172_v9  ;;  %v175_v12 = vld [vmem:[%s1143_s19 + $0x18] sm:$0xff]  ;;  %v176_v13 = vld [vmem:[%s1143_s19 + $0x20] sm:$0xff]  ;;  %v177_v14 = vld [vmem:[%s1143_s19 + $0x28] sm:$0xff]  ;;  %p993_p1 = scmp.lt.s32.totalorder %s991_s8, %s985_s5 }
  0x1a   : > { %876 = vmatmul.mubr.msk.f32.vlgmr.msra.gmra.mrb[0].mxu0 %vm190_vm0, %v173_v10  ;;  %v178_v15 = vld [vmem:[%s1143_s19 + $0x30] sm:$0xff]  ;;  %v179_v16 = vld [vmem:[%s1143_s19 + $0x38] sm:$0xff]  ;;  %v180_v17 = vld [vmem:[%s1143_s19 + $0x40] sm:$0xff]  ;;  %p987_p12 = pnand %p986_p11, %p1111_p5 }
  0x1b   : > { %878 = vmatprep.mubr.msk.f32.mxu0 %vm190_vm0, %v174_v11  ;;  %v181_v18 = vld [vmem:[%s1143_s19 + $0x48] sm:$0xff]  ;;  %v182_v19 = vld [vmem:[%s1143_s19 + $0x50] sm:$0xff]  ;;  %v183_v20 = vld [vmem:[%s1143_s19 + $0x58] sm:$0xff]  ;;  %p994_p2 = por %p993_p1, %p992_p0 }
  0x1c   : > { %v184_v21 = vld [vmem:[%s1143_s19 + $0x60] sm:$0xff]  ;;  %v185_v22 = vld [vmem:[%s1143_s19 + $0x68] sm:$0xff]  ;;  %v186_v23 = vld [vmem:[%s1143_s19 + $0x70] sm:$0xff]  ;;  %p988_p13 = pneg %p987_p12 }
  0x1d   : > { %v187_v24 = vld [vmem:[%s1143_s19 + $0x78] sm:$0xff] }
  0x1e   : > { %879 = vmatmul.mubr.msk.f32.gmra.mrb[2].mxu0 %vm190_vm0, %v175_v12  ;;  %p995_p3 = pnand %p994_p2, %p988_p13 }
  0x1f   : > { %881 = vmatprep.mubr.msk.f32.mxu0 %vm190_vm0, %v176_v13 }
  0x22   : > { %882 = vmatmul.mubr.msk.f32.gmra.mrb[4].mxu0 %vm190_vm0, %v177_v14 }
  0x23   : > { %884 = vmatprep.mubr.msk.f32.mxu0 %vm190_vm0, %v178_v15 }
  0x26   : > { %885 = vmatmul.mubr.msk.f32.gmra.mrb[6].mxu0 %vm190_vm0, %v179_v16 }
  0x27   : > { %887 = vmatprep.mubr.msk.f32.mxu0 %vm190_vm0, %v180_v17 }
  0x2a   : > { %888 = vmatmul.mubr.msk.f32.gmra.mrb[8].mxu0 %vm190_vm0, %v181_v18 }
  0x2b   : > { %890 = vmatprep.mubr.msk.f32.mxu0 %vm190_vm0, %v182_v19 }
  0x2e   : > { %891 = vmatmul.mubr.msk.f32.gmra.mrb[10].mxu0 %vm190_vm0, %v183_v20 }
  0x2f   : > { %893 = vmatprep.mubr.msk.f32.mxu0 %vm190_vm0, %v184_v21 }
  0x32   : > { %894 = vmatmul.mubr.msk.f32.gmra.mrb[12].mxu0 %vm190_vm0, %v185_v22 }
  0x33   : > { %896 = vmatprep.mubr.msk.f32.mxu0 %vm190_vm0, %v186_v23 }
  0x36   : > { %897 = vmatmul.mubr.msk.f32.gmra.mrb[14].mxu0 %vm190_vm0, %v187_v24 }
  0xed   : > { %v877_v25 = vpop.f32.mrb[0].mxu0 }
  0xee   : > { %v1178_v26 = vsel %vm388_vm1, %v877_v25, 1.0  ;;  %v305_v27 = vpop.f32.mrb[1].mxu0 }
  0xef   : > { %v1181_v28 = vsel %vm388_vm1, %v305_v27, 1.0  ;;  %907 = vmatprep.mubr.msk.f32.mxu1 %vm388_vm1, %v305_v27 }
  0xf0   : > { %908 = vmatmul.mubr.msk.f32.vlgmr.msra.gmra.mrb[0].mxu1 %vm388_vm1, %v877_v25 }
  0xf1   : > { %v880_v29 = vpop.f32.mrb[2].mxu0 }
  0xf2   : > { %v1186_v30 = vsel %vm388_vm1, %v880_v29, 1.0  ;;  %v315_v31 = vpop.f32.mrb[3].mxu0 }
  0xf3   : > { %v1189_v32 = vsel %vm388_vm1, %v315_v31, 1.0  ;;  %910 = vmatprep.mubr.msk.f32.mxu1 %vm388_vm1, %v315_v31 }
  0xf4   : > { %911 = vmatmul.mubr.msk.f32.gmra.mrb[2].mxu1 %vm388_vm1, %v880_v29 }
  0xf5   : > { %v883_v33 = vpop.f32.mrb[4].mxu0 }
  0xf6   : > { %v1194_v34 = vsel %vm388_vm1, %v883_v33, 1.0  ;;  %v325_v35 = vpop.f32.mrb[5].mxu0 }
  0xf7   : > { %v1197_v36 = vsel %vm388_vm1, %v325_v35, 1.0  ;;  %913 = vmatprep.mubr.msk.f32.mxu1 %vm388_vm1, %v325_v35 }
  0xf8   : > { %914 = vmatmul.mubr.msk.f32.gmra.mrb[4].mxu1 %vm388_vm1, %v883_v33 }
  0xf9   : > { %v886_v37 = vpop.f32.mrb[6].mxu0 }
  0xfa   : > { %v1202_v38 = vsel %vm388_vm1, %v886_v37, 1.0  ;;  %v335_v39 = vpop.f32.mrb[7].mxu0 }
  0xfb   : > { %v1205_v40 = vsel %vm388_vm1, %v335_v39, 1.0  ;;  %916 = vmatprep.mubr.msk.f32.mxu1 %vm388_vm1, %v335_v39 }
  0xfc   : > { %917 = vmatmul.mubr.msk.f32.gmra.mrb[6].mxu1 %vm388_vm1, %v886_v37 }
  0xfd   : > { %v889_v41 = vpop.f32.mrb[8].mxu0 }
  0xfe   : > { %v1210_v42 = vsel %vm388_vm1, %v889_v41, 1.0  ;;  %v345_v43 = vpop.f32.mrb[9].mxu0 }
  0xff   : > { %v1213_v44 = vsel %vm388_vm1, %v345_v43, 1.0  ;;  %919 = vmatprep.mubr.msk.f32.mxu1 %vm388_vm1, %v345_v43 }
 0x100   : > { %920 = vmatmul.mubr.msk.f32.gmra.mrb[8].mxu1 %vm388_vm1, %v889_v41 }
 0x101   : > { %v892_v45 = vpop.f32.mrb[10].mxu0 }
 0x102   : > { %v1218_v46 = vsel %vm388_vm1, %v892_v45, 1.0  ;;  %v355_v47 = vpop.f32.mrb[11].mxu0 }
 0x103   : > { %v1221_v48 = vsel %vm388_vm1, %v355_v47, 1.0  ;;  %922 = vmatprep.mubr.msk.f32.mxu1 %vm388_vm1, %v355_v47 }
 0x104   : > { %923 = vmatmul.mubr.msk.f32.gmra.mrb[10].mxu1 %vm388_vm1, %v892_v45 }
 0x105   : > { %v895_v49 = vpop.f32.mrb[12].mxu0 }
 0x106   : > { %v1226_v50 = vsel %vm388_vm1, %v895_v49, 1.0  ;;  %v365_v51 = vpop.f32.mrb[13].mxu0 }
 0x107   : > { %v1229_v52 = vsel %vm388_vm1, %v365_v51, 1.0  ;;  %925 = vmatprep.mubr.msk.f32.mxu1 %vm388_vm1, %v365_v51 }
 0x108   : > { %926 = vmatmul.mubr.msk.f32.gmra.mrb[12].mxu1 %vm388_vm1, %v895_v49 }
 0x109   : > { %v898_v53 = vpop.f32.mrb[14].mxu0 }
 0x10a   : > { %v1234_v54 = vsel %vm388_vm1, %v898_v53, 1.0  ;;  %v375_v55 = vpop.f32.mrb[15].mxu0 }
 0x10b   : > { %v1237_v56 = vsel %vm388_vm1, %v375_v55, 1.0  ;;  %928 = vmatprep.mubr.msk.f32.mxu1 %vm388_vm1, %v375_v55 }
 0x10c   : > { %929 = vmatmul.mubr.msk.f32.gmra.mrb[14].mxu1 %vm388_vm1, %v898_v53 }
 0x1c3   : > { %v909_v57 = vpop.f32.mrb[0].mxu1 }
 0x1c4   : > { %600 = vrot.lane.b32.xlu0 %v909_v57, %s1049_s20  ;;  %v503_v58 = vpop.f32.mrb[1].mxu1 }
 0x1c7   : > { %v912_v59 = vpop.f32.mrb[2].mxu1 }
 0x1c8   : > { %598 = vrot.lane.b32.xlu0 %v503_v58, %s1049_s20  ;;  %604 = vrot.lane.b32.xlu1 %v912_v59, %s1049_s20  ;;  %v513_v60 = vpop.f32.mrb[3].mxu1 }
 0x1cb   : > { %v915_v61 = vpop.f32.mrb[4].mxu1 }
 0x1cc   : > { %602 = vrot.lane.b32.xlu1 %v513_v60, %s1049_s20  ;;  %v523_v62 = vpop.f32.mrb[5].mxu1 }
 0x1cd   : > { %606 = vrot.lane.b32.xlu0 %v523_v62, %s1049_s20 }
 0x1cf   : > { %v918_v63 = vpop.f32.mrb[6].mxu1 }
 0x1d0   : > { %608 = vrot.lane.b32.xlu1 %v915_v61, %s1049_s20  ;;  %v533_v0 = vpop.f32.mrb[7].mxu1 }
 0x1d1   : > { %610 = vrot.lane.b32.xlu0 %v533_v0, %s1049_s20 }
 0x1d3   : > { %v921_v1 = vpop.f32.mrb[8].mxu1 }
 0x1d4   : > { %612 = vrot.lane.b32.xlu1 %v918_v63, %s1049_s20  ;;  %v543_v2 = vpop.f32.mrb[9].mxu1 }
 0x1d5   : > { %614 = vrot.lane.b32.xlu0 %v543_v2, %s1049_s20 }
 0x1d7   : > { %v924_v3 = vpop.f32.mrb[10].mxu1 }
 0x1d8   : > { %616 = vrot.lane.b32.xlu1 %v921_v1, %s1049_s20  ;;  %v553_v4 = vpop.f32.mrb[11].mxu1 }
 0x1d9   : > { %618 = vrot.lane.b32.xlu0 %v553_v4, %s1049_s20 }
 0x1db   : > { %v927_v5 = vpop.f32.mrb[12].mxu1 }
 0x1dc   : > { %620 = vrot.lane.b32.xlu1 %v924_v3, %s1049_s20  ;;  %v563_v6 = vpop.f32.mrb[13].mxu1 }
 0x1dd   : > { %622 = vrot.lane.b32.xlu0 %v563_v6, %s1049_s20 }
 0x1df   : > { %v930_v7 = vpop.f32.mrb[14].mxu1 }
 0x1e0   : > { %624 = vrot.lane.b32.xlu1 %v927_v5, %s1049_s20  ;;  %v573_v8 = vpop.f32.mrb[15].mxu1 }
 0x1e1   : > { %626 = vrot.lane.b32.xlu0 %v573_v8, %s1049_s20 }
 0x1e4   : > { %628 = vrot.lane.b32.xlu1 %v930_v7, %s1049_s20 }
 0x236   : > { %v601_v9 = vpop.permute.xlu0 %600 }
 0x237   : > { %v664_v10 = vsel %vm662_vm2, %v1178_v26, %v601_v9 }
 0x238   : > { %v681_v11 = vsel %vm679_vm3, %v664_v10, 0.0 }
 0x239   : > { %697 = vst [vmem:[%s1263_s26 + $0x8] sm:$0xff] %v681_v11 }
 0x23a   : > { %v599_v12 = vpop.permute.xlu0 %598  ;;  %v605_v13 = vpop.permute.xlu1 %604 }
 0x23b   : > { %v663_v14 = vsel %vm662_vm2, %v1181_v28, %v599_v12  ;;  %v666_v15 = vsel %vm662_vm2, %v1186_v30, %v605_v13 }
 0x23c   : > { %v680_v16 = vsel %vm679_vm3, %v663_v14, 0.0  ;;  %v683_v17 = vsel %vm679_vm3, %v666_v15, 0.0 }
 0x23d   : > { %696 = vst [vmem:[%s1263_s26] sm:$0xff] %v680_v16  ;;  %699 = vst [vmem:[%s1263_s26 + $0x18] sm:$0xff] %v683_v17 }
 0x23e   : > { %v603_v18 = vpop.permute.xlu1 %602 }
 0x23f   : > { %v665_v19 = vsel %vm662_vm2, %v1189_v32, %v603_v18  ;;  %v607_v20 = vpop.permute.xlu0 %606 }
 0x240   : > { %v682_v21 = vsel %vm679_vm3, %v665_v19, 0.0  ;;  %v667_v22 = vsel %vm662_vm2, %v1197_v36, %v607_v20 }
 0x241   : > { %698 = vst [vmem:[%s1263_s26 + $0x10] sm:$0xff] %v682_v21  ;;  %v684_v23 = vsel %vm679_vm3, %v667_v22, 0.0 }
 0x242   : > { %700 = vst [vmem:[%s1263_s26 + $0x20] sm:$0xff] %v684_v23  ;;  %v609_v24 = vpop.permute.xlu1 %608 }
 0x243   : > { %v668_v25 = vsel %vm662_vm2, %v1194_v34, %v609_v24  ;;  %v611_v26 = vpop.permute.xlu0 %610 }
 0x244   : > { %v685_v27 = vsel %vm679_vm3, %v668_v25, 0.0  ;;  %v669_v28 = vsel %vm662_vm2, %v1205_v40, %v611_v26 }
 0x245   : > { %701 = vst [vmem:[%s1263_s26 + $0x28] sm:$0xff] %v685_v27  ;;  %v686_v29 = vsel %vm679_vm3, %v669_v28, 0.0 }
 0x246   : > { %702 = vst [vmem:[%s1263_s26 + $0x30] sm:$0xff] %v686_v29  ;;  %v613_v30 = vpop.permute.xlu1 %612 }
 0x247   : > { %v670_v31 = vsel %vm662_vm2, %v1202_v38, %v613_v30  ;;  %v615_v32 = vpop.permute.xlu0 %614 }
 0x248   : > { %v687_v33 = vsel %vm679_vm3, %v670_v31, 0.0  ;;  %v671_v34 = vsel %vm662_vm2, %v1213_v44, %v615_v32 }
 0x249   : > { %703 = vst [vmem:[%s1263_s26 + $0x38] sm:$0xff] %v687_v33  ;;  %v688_v35 = vsel %vm679_vm3, %v671_v34, 0.0 }
 0x24a   : > { %704 = vst [vmem:[%s1263_s26 + $0x40] sm:$0xff] %v688_v35  ;;  %v617_v36 = vpop.permute.xlu1 %616 }
 0x24b   : > { %v672_v37 = vsel %vm662_vm2, %v1210_v42, %v617_v36  ;;  %v619_v39 = vpop.permute.xlu0 %618 }
 0x24c   : > { %v689_v40 = vsel %vm679_vm3, %v672_v37, 0.0  ;;  %v673_v38 = vsel %vm662_vm2, %v1221_v48, %v619_v39 }
 0x24d   : > { %705 = vst [vmem:[%s1263_s26 + $0x48] sm:$0xff] %v689_v40  ;;  %v690_v41 = vsel %vm679_vm3, %v673_v38, 0.0 }
 0x24e   : > { %706 = vst [vmem:[%s1263_s26 + $0x50] sm:$0xff] %v690_v41  ;;  %v621_v43 = vpop.permute.xlu1 %620 }
 0x24f   : > { %v674_v44 = vsel %vm662_vm2, %v1218_v46, %v621_v43  ;;  %v623_v45 = vpop.permute.xlu0 %622 }
 0x250   : > { %v691_v42 = vsel %vm679_vm3, %v674_v44, 0.0  ;;  %v675_v47 = vsel %vm662_vm2, %v1229_v52, %v623_v45 }
 0x251   : > { %707 = vst [vmem:[%s1263_s26 + $0x58] sm:$0xff] %v691_v42  ;;  %v692_v48 = vsel %vm679_vm3, %v675_v47, 0.0 }
 0x252   : > { %708 = vst [vmem:[%s1263_s26 + $0x60] sm:$0xff] %v692_v48  ;;  %v625_v49 = vpop.permute.xlu1 %624 }
 0x253   : > { %v676_v51 = vsel %vm662_vm2, %v1226_v50, %v625_v49  ;;  %v627_v53 = vpop.permute.xlu0 %626 }
 0x254   : > { %v693_v46 = vsel %vm679_vm3, %v676_v51, 0.0  ;;  %v677_v55 = vsel %vm662_vm2, %v1237_v56, %v627_v53 }
 0x255   : > { %709 = vst [vmem:[%s1263_s26 + $0x68] sm:$0xff] %v693_v46  ;;  %v694_v52 = vsel %vm679_vm3, %v677_v55, 0.0 }
 0x256   : > { %710 = vst [vmem:[%s1263_s26 + $0x70] sm:$0xff] %v694_v52  ;;  %v629_v57 = vpop.permute.xlu1 %628 }
 0x257   : > { %v678_v50 = vsel %vm662_vm2, %v1234_v54, %v629_v57 }
 0x258   : > { %v695_v56 = vsel %vm679_vm3, %v678_v50, 0.0 }
 0x259   : > { %711 = vst [vmem:[%s1263_s26 + $0x78] sm:$0xff] %v695_v56 }
 0x25a   : > { %998 = shalt.err (!%p995_p3)
}
 0x25b   : > { %s999_s9 = scalar_lea.hbm %s1327_s4, 2048  ;;  %s1003_s17 = scalar_lea.hbm %s1381_s3, 6144 }
 0x25c   : > { %p1000_p4 = scmp.ne.s32.totalorder %s1327_s4, %s999_s9  ;;  %p1004_p9 = scmp.lt.u32.totalorder %s1327_s4, %s1381_s3 }
 0x25d   : > { %p1005_p10 = scmp.lt.u32.totalorder %s1003_s17, %s999_s9  ;;  %p1007_p12 = scmp.lt.u32.totalorder %s999_s9, %s1327_s4 }
 0x25e   : > { %p1001_p7 = pnand %p1000_p4, %p1111_p5 }
 0x25f   : > { %p1006_p11 = por %p1005_p10, %p1004_p9 }
 0x260   : > { %p1002_p8 = pneg %p1001_p7 }
 0x261   : > { %p1008_p13 = por %p1007_p12, %p1006_p11 }
 0x263   : > { %p1009_p0 = pnand %p1008_p13, %p1002_p8 }
 0x265   : > { %1012 = shalt.err (!%p1009_p0)
}
 0x266   : > { %s1051_s24 = smov 128   ;;  %s1052_s25 = smov 8  }
 0x267   : > { %943 = dma.vmem_to_hbm [thread:$0]  (%p1111_p5), %s1329_s28, 2048, %s1327_s4, %s1337_s16, %s1051_s24, %s1051_s24, %s1052_s25  }
 0x268 PF: > { %p949_p1 = scmp.ge.s32.totalorder %s1047_s15, 2  ;;  %s741_s26 = sand.u32 1, %s1035_s12  }
 0x269   : > { %s742_s27 = scalar_lea.sflag [#allocation3], %s741_s26 }
 0x26a   : > { %p946_p2 = pnand %p949_p1, %p1115_p6 }
 0x26c   : > { %1030 = dma.done.wait (!%p946_p2), %s742_s27, 2048  }
 0x26d   : > { %1032 = vsyncadd (!%p946_p2), %s742_s27, 4294965248  ;;  %p13_p3 = scmp.ge.s32.totalorder %s1098_s18, 5   ;;  %s1384_s12 = smov %s1039_s13 }
 0x26e   : > { %s1385_s13 = smov %s1043_s14  ;;  %s1386_s14 = smov %s1109_s21 }
 0x26f   : > { %s1387_s15 = smov %s1098_s18  ;;  %15 = sbr.rel (!%p13_p3) target bundleno = 3 (0x3), region = 67 }
 0x276   :  { %747 = vsyncpa [#allocation3], 1 }
 0x277   :  { %749 = vsyncpa [#allocation3 + $0x1], 1 }

</bundles_post_ra>
